<compile_context>
chip_gen: v7x
topology: tpu7x:2x2x1
jax: 0.10.0
libtpu: 0.0.40
codegen_flags: <defaults>
</compile_context>

<pallas_src>
import jax
import jax.numpy as jnp
from jax.experimental import pallas as pl
from jax.experimental.pallas import tpu as pltpu

# ---- hyperparameters implied by the module's __init__ (small synthetic config) ----
HIDDEN = 32      # hidden_size
D_FF = 64        # args.proj_hidden
LN_EPS = 1e-5    # torch.nn.LayerNorm default


def _make_ffn_kernel(relu_in_low_precision):
    def ffn_kernel(x_ref, w1_ref, w2_ref, out_ref):
        x = x_ref[...]                                   # (TM, H) f32 residual path
        cdt = w1_ref.dtype                               # compute dtype (bf16 if pre-cast)
        xb = x.astype(cdt)

        h1 = jnp.dot(xb, w1_ref[...],
                     preferred_element_type=jnp.float32)            # (TM, D_FF) f32 acc
        if relu_in_low_precision:
            # v6e/v7x: packed-bf16 VALU -> ReLU on half the vregs. Identical result.
            h1 = jnp.maximum(h1.astype(cdt), 0)
        else:
            # v5e: no bf16 VALU path; ReLU in f32 then downcast.
            h1 = jnp.maximum(h1, 0.0).astype(cdt)
        # Dropout == identity (inference semantics).

        ffn = jnp.dot(h1, w2_ref[...],
                      preferred_element_type=jnp.float32)           # (TM, H) f32

        y = ffn + x                                      # residual add in f32
        # LayerNorm, gamma=1 beta=0 (module builds fresh nn.LayerNorm each forward).
        # Single-pass statistics: var = E[y^2] - mean^2.
        mean = jnp.mean(y, axis=-1, keepdims=True)
        mean_sq = jnp.mean(y * y, axis=-1, keepdims=True)
        var = mean_sq - mean * mean
        out_ref[...] = (y - mean) * jax.lax.rsqrt(var + LN_EPS)
    return ffn_kernel


def _is_v5e():
    try:
        kind = jax.devices()[0].device_kind.lower()
    except Exception:
        return False
    return ("v5e" in kind) or ("v5 lite" in kind) or ("v5lite" in kind)


# Conservative working-set budget that fits every generation's default scoped VMEM
# (v5e 16 MiB, v6e/v7x 32 MiB defaults); leaves headroom for compiler temporaries.
_VMEM_BUDGET_BYTES = 16 * 1024 * 1024
_VMEM_LIMIT_BYTES = 32 * 1024 * 1024
_SMALL_M_SINGLE_STEP = 1024   # per-step overhead (~0.35us) dominates below this


def _pick_tile_m(M, H, d_ff):
    # 1) Tiny/moderate M: one grid step; block == full array (always layout-legal),
    #    zero extra DMA/prologue steps.
    if M <= _SMALL_M_SINGLE_STEP:
        return M

    # 2) Large M: pick the biggest sublane-aligned tile that fits the VMEM budget.
    #    Double-buffered x/out tiles (f32) + h1 temp (f32) + bf16 temps + resident weights.
    def vmem_bytes(tm):
        io = 2 * 2 * (tm * H * 4)                       # x + out tiles, 2 buffers each
        tmp = tm * d_ff * 4 + tm * d_ff * 2 + tm * H * 2  # h1 f32 + bf16 operand temps
        w = 2 * 2 * (H * d_ff * 2)                      # both weights, 2 buffers, bf16
        return io + tmp + w

    for tm in (8192, 4096, 2048, 1024):
        if M % tm == 0 and vmem_bytes(tm) <= _VMEM_BUDGET_BYTES:
            return tm
    for tm in (512, 256, 128, 64, 32, 16, 8):
        if M % tm == 0:
            return tm
    return M   # ragged M: single full-array block


def poswise_ffn(x, w1, w2):
    """x: (B, S, H) f32; w1: (H, D_FF); w2: (D_FF, H) in the compute dtype (pre-cast by
    make_poswise_ffn).  Returns (B, S, H) f32."""
    B, S, H = x.shape
    d_ff = w1.shape[1]
    assert H == w1.shape[0] and w1.shape[1] == w2.shape[0] and w2.shape[1] == H

    M = B * S
    x2 = x.reshape(M, H)                                 # collapse batch*seq -> MXU M dim

    tile_m = _pick_tile_m(M, H, d_ff)
    grid = (M // tile_m,)

    kernel = _make_ffn_kernel(relu_in_low_precision=not _is_v5e())

    out2 = pl.pallas_call(
        kernel,
        out_shape=jax.ShapeDtypeStruct((M, H), jnp.float32),
        grid_spec=pltpu.PrefetchScalarGridSpec(
            num_scalar_prefetch=0,
            grid=grid,
            in_specs=[
                pl.BlockSpec((tile_m, H), lambda i: (i, 0)),   # x row tile
                pl.BlockSpec((H, d_ff), lambda i: (0, 0)),     # w1 (VMEM-resident)
                pl.BlockSpec((d_ff, H), lambda i: (0, 0)),     # w2 (VMEM-resident)
            ],
            out_specs=pl.BlockSpec((tile_m, H), lambda i: (i, 0)),
        ),
        compiler_params=pltpu.CompilerParams(
            dimension_semantics=("parallel",),
            vmem_limit_bytes=_VMEM_LIMIT_BYTES),
    )(x2, w1, w2)
    return out2.reshape(B, S, H)


def make_poswise_ffn(w1, w2, compute_dtype=jnp.bfloat16):
    """Cast weights ONCE (parameter-init time), return a forward fn.  Avoids re-emitting
    the bf16 cast as a wrapper-side XLA op on every call (review feedback)."""
    w1c = jnp.asarray(w1, dtype=compute_dtype)
    w2c = jnp.asarray(w2, dtype=compute_dtype)

    def fn(x):
        return poswise_ffn(x, w1c, w2c)
    return fn


def ffn_reference(x, w1, w2):
    y = jnp.maximum(x @ w1, 0.0) @ w2 + x
    mean = jnp.mean(y, axis=-1, keepdims=True)
    var = jnp.mean((y - mean) ** 2, axis=-1, keepdims=True)
    return (y - mean) * jax.lax.rsqrt(var + LN_EPS)


if __name__ == "__main__":
    key = jax.random.PRNGKey(0)
    kx, k1, k2 = jax.random.split(key, 3)
    B, S = 2, 8
    x = jax.random.normal(kx, (B, S, HIDDEN), dtype=jnp.float32)
    # weights stored (in, out) -- transpose of torch nn.Linear.weight
    w1 = 0.02 * jax.random.normal(k1, (HIDDEN, D_FF), jnp.float32)
    w2 = 0.02 * jax.random.normal(k2, (D_FF, HIDDEN), jnp.float32)

    ffn = make_poswise_ffn(w1, w2)      # weights pre-cast to bf16 exactly once here
    out = ffn(x)
    jax.block_until_ready(out)
    assert out.shape == (B, S, HIDDEN)

    ref = ffn_reference(x, w1, w2)
    err = float(jnp.max(jnp.abs(out - ref)))
    assert jnp.allclose(out, ref, atol=5e-2), err

    print("KERNEL_OK")
</pallas_src>

<mosaic_0001>
module attributes {stable_mosaic.version = 11 : i64} {
  func.func @ffn_kernel(%arg0: i32, %arg1: memref<16x32xf32, #tpu.memory_space<vmem>>, %arg2: memref<32x64xbf16, #tpu.memory_space<vmem>>, %arg3: memref<64x32xbf16, #tpu.memory_space<vmem>>, %arg4: memref<16x32xf32, #tpu.memory_space<vmem>>) attributes {dimension_semantics = [#tpu.dimension_semantics<parallel>], iteration_bounds = array<i64: 1>, scalar_prefetch = 0 : i64, scratch_operands = 0 : i64, tpu.core_type = #tpu.core_type<tc>, window_params = [{transform_indices = @transform_0, window_bounds = array<i64: 16, 32>}, {pipeline_mode = #tpu.pipeline_mode<synchronous>, transform_indices = @transform_1, window_bounds = array<i64: 32, 64>}, {pipeline_mode = #tpu.pipeline_mode<synchronous>, transform_indices = @transform_2, window_bounds = array<i64: 64, 32>}, {transform_indices = @transform_3, window_bounds = array<i64: 16, 32>}]} {
    %c0 = arith.constant 0 : index
    %c0_0 = arith.constant 0 : index
    %0 = vector.load %arg1[%c0, %c0_0] : memref<16x32xf32, #tpu.memory_space<vmem>>, vector<16x32xf32>
    %1 = arith.truncf %0 : vector<16x32xf32> to vector<16x32xbf16>
    %c0_1 = arith.constant 0 : index
    %c0_2 = arith.constant 0 : index
    %2 = vector.load %arg2[%c0_1, %c0_2] : memref<32x64xbf16, #tpu.memory_space<vmem>>, vector<32x64xbf16>
    %cst = arith.constant dense<0.000000e+00> : vector<16x64xf32>
    %3 = tpu.matmul %1, %2, %cst {dimension_numbers = #tpu.dot_dimension_numbers<[1], [0], [0], [1], [0, 0, 1, 1], [], []>} : vector<16x32xbf16>, vector<32x64xbf16>, vector<16x64xf32> -> vector<16x64xf32>
    %4 = arith.truncf %3 : vector<16x64xf32> to vector<16x64xbf16>
    %cst_3 = arith.constant 0.000000e+00 : bf16
    %5 = vector.broadcast %cst_3 : bf16 to vector<16x64xbf16>
    %6 = arith.maximumf %4, %5 : vector<16x64xbf16>
    %c0_4 = arith.constant 0 : index
    %c0_5 = arith.constant 0 : index
    %7 = vector.load %arg3[%c0_4, %c0_5] : memref<64x32xbf16, #tpu.memory_space<vmem>>, vector<64x32xbf16>
    %cst_6 = arith.constant dense<0.000000e+00> : vector<16x32xf32>
    %8 = tpu.matmul %6, %7, %cst_6 {dimension_numbers = #tpu.dot_dimension_numbers<[1], [0], [0], [1], [0, 0, 1, 1], [], []>} : vector<16x64xbf16>, vector<64x32xbf16>, vector<16x32xf32> -> vector<16x32xf32>
    %9 = arith.addf %8, %0 : vector<16x32xf32>
    %cst_7 = arith.constant dense<0.000000e+00> : vector<16xf32>
    %10 = vector.multi_reduction <add>, %9, %cst_7 [1] : vector<16x32xf32> to vector<16xf32>
    %11 = vector.shape_cast %10 : vector<16xf32> to vector<16x1xf32>
    %cst_8 = arith.constant 3.200000e+01 : f32
    %12 = vector.broadcast %cst_8 : f32 to vector<16x1xf32>
    %13 = arith.divf %11, %12 : vector<16x1xf32>
    %14 = arith.mulf %9, %9 : vector<16x32xf32>
    %cst_9 = arith.constant dense<0.000000e+00> : vector<16xf32>
    %15 = vector.multi_reduction <add>, %14, %cst_9 [1] : vector<16x32xf32> to vector<16xf32>
    %16 = vector.shape_cast %15 : vector<16xf32> to vector<16x1xf32>
    %cst_10 = arith.constant 3.200000e+01 : f32
    %17 = vector.broadcast %cst_10 : f32 to vector<16x1xf32>
    %18 = arith.divf %16, %17 : vector<16x1xf32>
    %19 = arith.mulf %13, %13 : vector<16x1xf32>
    %20 = arith.subf %18, %19 : vector<16x1xf32>
    %21 = vector.broadcast %13 : vector<16x1xf32> to vector<16x32xf32>
    %22 = arith.subf %9, %21 : vector<16x32xf32>
    %cst_11 = arith.constant 9.99999974E-6 : f32
    %23 = vector.broadcast %cst_11 : f32 to vector<16x1xf32>
    %24 = arith.addf %20, %23 : vector<16x1xf32>
    %25 = math.rsqrt %24 : vector<16x1xf32>
    %26 = vector.broadcast %25 : vector<16x1xf32> to vector<16x32xf32>
    %27 = arith.mulf %22, %26 : vector<16x32xf32>
    %c0_12 = arith.constant 0 : index
    %c0_13 = arith.constant 0 : index
    %28 = vector.load %arg4[%c0_12, %c0_13] : memref<16x32xf32, #tpu.memory_space<vmem>>, vector<16x32xf32>
    tpu.vector_store %arg4[%c0_12, %c0_13], %27 {strides = array<i32>} : memref<16x32xf32, #tpu.memory_space<vmem>>, vector<16x32xf32>,
    return
  }
  func.func @transform_0(%arg0: i32) -> (i32, i32) {
    %c0_i32 = arith.constant 0 : i32
    %c0_i32_0 = arith.constant 0 : i32
    return %arg0, %c0_i32 : i32, i32
  }
  func.func @transform_1(%arg0: i32) -> (i32, i32) {
    %c0_i32 = arith.constant 0 : i32
    %c0_i32_0 = arith.constant 0 : i32
    %c0_i32_1 = arith.constant 0 : i32
    return %c0_i32, %c0_i32_0 : i32, i32
  }
  func.func @transform_2(%arg0: i32) -> (i32, i32) {
    %c0_i32 = arith.constant 0 : i32
    %c0_i32_0 = arith.constant 0 : i32
    %c0_i32_1 = arith.constant 0 : i32
    return %c0_i32, %c0_i32_0 : i32, i32
  }
  func.func @transform_3(%arg0: i32) -> (i32, i32) {
    %c0_i32 = arith.constant 0 : i32
    %c0_i32_0 = arith.constant 0 : i32
    return %arg0, %c0_i32 : i32, i32
  }
}

</mosaic_0001>

<bundles_post_ra>
// kernel: tpu_custom_call.1
= control target key start
LH: loop header
LB: loop body
LE: loop exit
PB: predicated region body
PF: predicated region fallthrough
CT: control target
= control target key end

     0   :  { %v284_v1 = vmov 0.0   ;;  %vm285_vm0 = vmmov 0   ;;  %vm35_vm1 = vcmask 261120   ;;  %s353_s0 = inlined_call_operand.vmem [shape: f32[16,32], index: 0, kind: input, shape index: {}]   ;;  %s354_s1 = inlined_call_operand.vmem [shape: bf16[32,64], index: 1, kind: input, shape index: {}]   ;;  %s355_s2 = inlined_call_operand.vmem [shape: bf16[64,32], index: 2, kind: input, shape index: {}]   ;;  %s356_s3 = inlined_call_operand.hbm [shape: f32[16,32], index: 3, kind: output, shape index: {}]  }
   0x1   :  { %v250_v0 = vld [vmem:[%s354_s1] sm:$0xff]   ;;  %224 = vmatprep.subr.bf16.mxu0 %v284_v1  ;;  %v251_v2 = vld [vmem:[%s354_s1 + $0x8] sm:$0xff]   ;;  %232 = vmatprep.subr.bf16.mxu1 %v284_v1 }
   0x2   :  { %225 = vmatpush3.bf16.msra.mxu0 %v250_v0  ;;  %228 = vmatprep.mubr.msk.bf16.mxu0 %vm285_vm0, %v284_v1  ;;  %v16_v3 = vld [vmem:[%s353_s0] sm:$0xff]  ;;  %v17_v4 = vld [vmem:[%s353_s0 + $0x8] sm:$0xff] }
   0x3   :  { %226 = vmatprep.subr.bf16.mxu0 %v284_v1  ;;  %v252_v5 = vld [vmem:[%s355_s2] sm:$0xff]   ;;  %240 = vmatprep.mubr.msk.bf16.mxu1 %vm285_vm0, %v284_v1  ;;  %v253_v6 = vld [vmem:[%s355_s2 + $0x8] sm:$0xff]   ;;  %v18_v7 = vpack.c.bf16 %v17_v4, %v16_v3 }
   0x4   :  { %233 = vmatpush3.bf16.msra.mxu1 %v252_v5 }
   0x5   :  { %234 = vmatprep.subr.bf16.mxu1 %v284_v1 }
   0x6   :  { %227 = vmatpush3.bf16.msra.mxu0 %v251_v2 }
   0x7   :  { %8 = vsyncpa [#allocation3], 0  ;;  %v254_v8 = vld [vmem:[%s355_s2 + $0x10] sm:$0xff]   ;;  %v255_v9 = vld [vmem:[%s355_s2 + $0x18] sm:$0xff]   ;;  %vm114_vm2 = vcmask 523264   ;;  %v286_v15 = vmov 0  }
   0x8   :  { %235 = vmatpush3.bf16.msra.mxu1 %v253_v6  ;;  %s287_s2 = smov [#allocation2]  }
   0x9   :  { %229 = vmatmul.mubr.msk.bf16.vlgmr.msra.gmra.mrb[0].mxu0 %vm35_vm1, %v18_v7  ;;  %236 = vmatprep.subr.bf16.mxu1 %v284_v1  ;;  %s197_s26 = sshll.u32 %s287_s2, 4  ;;  %s198_s26 = int_to_ptr.vmem [resolvable:$true] %s197_s26 }
   0xa   :  { %s260_s27 = scalar_lea.vmem %s198_s26, 256  ;;  %p265_p1 = scmp.lt.s32.totalorder %s198_s26, %s198_s26 }
   0xb   :  { %p261_p0 = scmp.ne.s32.totalorder %s198_s26, %s260_s27  ;;  %p266_p2 = scmp.lt.s32.totalorder %s260_s27, %s260_s27 }
   0xc   :  { %237 = vmatpush3.bf16.msra.mxu1 %v254_v8 }
   0xd   :  { %238 = vmatprep.subr.bf16.mxu1 %v284_v1  ;;  %p267_p3 = por %p266_p2, %p265_p1 }
   0xf   :  { %p268_p4 = pnand %p267_p3, %p261_p0 }
  0x10   :  { %239 = vmatpush3.bf16.msra.mxu1 %v255_v9 }
  0xdc   :  { %v73_v10 = vpop.f32.mrb[0].mxu0 }
  0xdd   :  { %v230_v11 = vpop.f32.mrb[1].mxu0 }
  0xde   :  { %v76_v12 = vpop.f32.mrb[2].mxu0 }
  0xdf   :  { %v80_v13 = vpack.c.bf16 %v76_v12, %v73_v10  ;;  %v231_v14 = vpop.f32.mrb[3].mxu0 }
  0xe1   :  { %v81_v16 = vmax.bf16 %v286_v15, %v80_v13 }
  0xe3   :  { %241 = vmatmul.mubr.msk.bf16.vlgmr.msra.gmra.mrb[0].mxu1 %vm114_vm2, %v81_v16 }
 0x1b6   :  { %v152_v17 = vpop.f32.mrb[0].mxu1 }
 0x1b7   :  { %v153_v18 = vadd.f32 %v152_v17, %v16_v3  ;;  %v242_v19 = vpop.f32.mrb[1].mxu1 }
 0x1b8   :  { %v155_v20 = vpop.f32.mrb[2].mxu1 }
 0x1b9   :  { %v156_v21 = vadd.f32 %v155_v20, %v17_v4  ;;  %v243_v22 = vpop.f32.mrb[3].mxu1  ;;  %v159_v23 = vsel %vm35_vm1, %v153_v18, 0.0  ;;  %v168_v24 = vmul.f32 %v153_v18, %v153_v18 }
 0x1ba   :  { %160 = vadd.xlane.f32.xlu0 %v159_v23 }
 0x1bb   :  { %v170_v25 = vsel %vm35_vm1, %v168_v24, 0.0  ;;  %v169_v26 = vmul.f32 %v156_v21, %v156_v21  ;;  %v162_v27 = vsel %vm35_vm1, %v156_v21, 0.0 }
 0x1bc   :  { %171 = vadd.xlane.f32.xlu1 %v170_v25 }
 0x1bd   :  { %v173_v28 = vsel %vm35_vm1, %v169_v26, 0.0 }
 0x1be   :  { %163 = vadd.xlane.f32.xlu0 %v162_v27 }
 0x1c0   :  { %174 = vadd.xlane.f32.xlu1 %v173_v28 }
 0x247   :  { %v161_v29 = vpop.xlane.xlu0 %160 }
 0x248   :  { %v166_v30 = vmul.f32 0.03125, %v161_v29 }
 0x249   :  { %v172_v31 = vpop.xlane.xlu1 %171 }
 0x24a   :  { %v178_v32 = vmul.f32 %v166_v30, %v166_v30  ;;  %v176_v33 = vmul.f32 0.03125, %v172_v31  ;;  %v182_v43 = vsub.f32 %v153_v18, %v166_v30 }
 0x24b   :  { %v164_v34 = vpop.xlane.xlu0 %163 }
 0x24c   :  { %v180_v35 = vsub.f32 %v176_v33, %v178_v32  ;;  %v167_v36 = vmul.f32 0.03125, %v164_v34 }
 0x24d   :  { %v175_v37 = vpop.xlane.xlu1 %174 }
 0x24e   :  { %v184_v38 = vadd.f32 1e-05, %v180_v35  ;;  %v179_v39 = vmul.f32 %v167_v36, %v167_v36  ;;  %v177_v40 = vmul.f32 0.03125, %v175_v37  ;;  %v183_v46 = vsub.f32 %v156_v21, %v167_v36 }
 0x250   :  { %256 = vrsqrt.f32 %v184_v38  ;;  %v181_v41 = vsub.f32 %v177_v40, %v179_v39 }
 0x252   :  { %v185_v42 = vadd.f32 1e-05, %v181_v41 }
 0x254   :  { %258 = vrsqrt.f32 %v185_v42 }
 0x25a   :  { %v257_v44 = vpop.eup %256 }
 0x25b   :  { %v188_v45 = vmul.f32 %v257_v44, %v182_v43 }
 0x25d   :  { %190 = vst.msk [vmem:[#allocation2] sm:$0xff] %vm35_vm1, %v188_v45 }
 0x25e   :  { %v259_v47 = vpop.eup %258 }
 0x25f   :  { %v189_v48 = vmul.f32 %v259_v47, %v183_v46 }
 0x261   :  { %191 = vst.msk [vmem:[#allocation2 + $0x8] sm:$0xff] %vm35_vm1, %v189_v48 }
 0x262   :  { %271 = shalt.err (!%p268_p4)
}
 0x263   :  { %s272_s30 = scalar_lea.hbm %s356_s3, 256 }
 0x264   :  { %p273_p5 = scmp.ne.s32.totalorder %s356_s3, %s272_s30  ;;  %p276_p6 = scmp.lt.u32.totalorder %s272_s30, %s356_s3 }
 0x266   :  { %p278_p7 = pnand %p276_p6, %p273_p5 }
 0x268   :  { %281 = shalt.err (!%p278_p7)
}
 0x269   :  { %s288_s8 = smov 128   ;;  %s289_s9 = smov 8  }
 0x26a   :  { %203 = dma.vmem_to_hbm [thread:$0]  %s198_s26, 256, %s356_s3, [#allocation3], %s288_s8, %s288_s8, %s289_s9  }
 0x26b   :  { %282 = dma.done.wait [#allocation3], 256  }
 0x26c   :  { %283 = vsyncadd [#allocation3], 4294967040 }
 0x26d   :  { %207 = vsyncpa [#allocation3], 1 }

</bundles_post_ra>
